<compile_context>
chip_gen: v6e
topology: v6e:2x2x1
jax: 0.10.0
libtpu: 0.0.40
codegen_flags: <defaults>
</compile_context>

<pallas_src>
import functools
import math

import jax
import jax.numpy as jnp
from jax.experimental import pallas as pl
from jax.experimental.pallas import tpu as pltpu


def _mos_head_kernel(x_ref, w_ref, b_ref, o_ref, acc_ref, *, total_t, needs_mask):
    # x_ref:   (B, tT, D)  feature tile (native dtype, streamed from HBM)
    # w_ref:   (1, D)      linear weight (VMEM-resident across the grid)
    # b_ref:   (1, 1)      linear bias (SMEM scalar)
    # o_ref:   (B, 1)      MOS scores (written once, last step)
    # acc_ref: (B, D) f32  running sum over time (VMEM scratch)
    t = pl.program_id(0)

    @pl.when(t == 0)
    def _init():
        acc_ref[...] = jnp.zeros_like(acc_ref)

    x = x_ref[...]                                   # (B, tT, D)
    if needs_mask:
        # Ragged last tile: zero rows past the true sequence length.
        _, t_tile, d = x_ref.shape
        row = jax.lax.broadcasted_iota(jnp.int32, (1, t_tile, d), 1)
        valid = (row + t * t_tile) < total_t
        x = jnp.where(valid, x, jnp.zeros_like(x))

    # Pure streaming adds over the time axis; accumulate in f32 without
    # materializing a full f32 copy of the tile.
    acc_ref[...] += jnp.sum(x, axis=1, dtype=jnp.float32)   # (B, D)

    @pl.when(t == pl.num_programs(0) - 1)
    def _finalize():
        pooled = acc_ref[...] * (1.0 / float(total_t))       # (B, D) f32
        w = w_ref[...].astype(jnp.float32)                   # (1, D)
        logits = jnp.sum(pooled * w, axis=-1, keepdims=True) + b_ref[0, 0]
        score = jax.nn.sigmoid(logits) * 4.0 + 1.0
        o_ref[...] = score.astype(o_ref.dtype)


def mos_predictor_head(features, weight, bias, *, t_tile=None):
    """features: (B, T, D); weight: (D,); bias: scalar -> (B,) MOS scores."""
    B, T, D = features.shape
    w2d = weight.reshape(1, D)
    b2d = jnp.asarray(bias, jnp.float32).reshape(1, 1)

    if t_tile is None:
        # Keep each feature tile ~<= 8 MiB so the double-buffered working set
        # (~16 MiB) fits comfortably even on v7x's 64 MiB VMEM.
        itemsize = jnp.dtype(features.dtype).itemsize
        budget = 8 * 1024 * 1024
        t_tile = max(8, budget // (B * D * itemsize))
        if t_tile >= T:
            t_tile = T
        else:
            t_tile = max(8, (t_tile // 8) * 8)   # keep sublane-aligned

    num_t = pl.cdiv(T, t_tile)
    needs_mask = (T % t_tile) != 0

    kernel = functools.partial(_mos_head_kernel, total_t=T, needs_mask=needs_mask)

    out = pl.pallas_call(
        kernel,
        out_shape=jax.ShapeDtypeStruct((B, 1), jnp.float32),
        grid_spec=pltpu.PrefetchScalarGridSpec(
            num_scalar_prefetch=0,
            grid=(num_t,),
            in_specs=[
                pl.BlockSpec((B, t_tile, D), lambda t: (0, t, 0)),
                pl.BlockSpec((1, D), lambda t: (0, 0)),
                pl.BlockSpec(memory_space=pltpu.MemorySpace.SMEM),
            ],
            out_specs=pl.BlockSpec((B, 1), lambda t: (0, 0)),
            scratch_shapes=[pltpu.VMEM((B, D), jnp.float32)],
        ),
        compiler_params=pltpu.CompilerParams(
            dimension_semantics=("arbitrary",),       # T is a reduction axis
            vmem_limit_bytes=48 * 1024 * 1024,
        ),
    )(features, w2d, b2d)
    return out[:, 0]  # squeeze(1)


def reference_head(features, weight, bias):
    pooled = jnp.mean(features.astype(jnp.float32), axis=1)
    logits = pooled @ weight.astype(jnp.float32) + bias
    return jax.nn.sigmoid(logits) * 4.0 + 1.0


if __name__ == "__main__":
    # Small shapes consistent with the module's forward:
    # SSL features x: (batch=2, seq=8, hidden=768) -- wav2vec_small hidden dim.
    B, T, D = 2, 8, 768

    key = jax.random.PRNGKey(0)
    k_x, k_w, k_b = jax.random.split(key, 3)

    features = jax.random.normal(k_x, (B, T, D), dtype=jnp.float32)

    # Deterministic nn.Linear(D, 1)-style init: U(-1/sqrt(D), 1/sqrt(D)).
    bound = 1.0 / math.sqrt(D)
    weight = jax.random.uniform(k_w, (D,), jnp.float32, -bound, bound)
    bias = jax.random.uniform(k_b, (), jnp.float32, -bound, bound)

    out = mos_predictor_head(features, weight, bias)
    jax.block_until_ready(out)

    ref = reference_head(features, weight, bias)
    assert out.shape == (B,), out.shape
    assert jnp.allclose(out, ref, atol=1e-5, rtol=1e-5), (out, ref)

    print("KERNEL_OK")
</pallas_src>

<mosaic_0001>
module attributes {stable_mosaic.version = 11 : i64} {
  func.func @_mos_head_kernel(%arg0: i32, %arg1: memref<2x8x768xf32, #tpu.memory_space<vmem>>, %arg2: memref<1x768xf32, #tpu.memory_space<vmem>>, %arg3: memref<1x1xf32, #tpu.memory_space<smem>>, %arg4: memref<2x1xf32, #tpu.memory_space<vmem>>, %arg5: memref<2x768xf32, #tpu.memory_space<vmem>>) attributes {dimension_semantics = [#tpu.dimension_semantics<arbitrary>], iteration_bounds = array<i64: 1>, scalar_prefetch = 0 : i64, scratch_operands = 1 : i64, tpu.core_type = #tpu.core_type<tc>, window_params = [{transform_indices = @transform_0, window_bounds = array<i64: 2, 8, 768>}, {pipeline_mode = #tpu.pipeline_mode<synchronous>, transform_indices = @transform_1, window_bounds = array<i64: 1, 768>}, {transform_indices = @transform_2, window_bounds = array<i64: 1, 1>}, {pipeline_mode = #tpu.pipeline_mode<synchronous>, transform_indices = @transform_3, window_bounds = array<i64: 2, 1>}]} {
    %c0_i32 = arith.constant 0 : i32
    %0 = arith.cmpi eq, %arg0, %c0_i32 : i32
    %1 = arith.extui %0 : i1 to i32
    %c0_i32_0 = arith.constant 0 : i32
    %2 = arith.cmpi ne, %1, %c0_i32_0 : i32
    scf.if %2 {
      %cst_9 = arith.constant 0.000000e+00 : f32
      %11 = vector.broadcast %cst_9 : f32 to vector<2x768xf32>
      %c0_10 = arith.constant 0 : index
      %c0_11 = arith.constant 0 : index
      %12 = vector.load %arg5[%c0_10, %c0_11] : memref<2x768xf32, #tpu.memory_space<vmem>>, vector<2x768xf32>
      tpu.vector_store %arg5[%c0_10, %c0_11], %11 {strides = array<i32>} : memref<2x768xf32, #tpu.memory_space<vmem>>, vector<2x768xf32>,
    } else {
    }
    %c0 = arith.constant 0 : index
    %c0_1 = arith.constant 0 : index
    %c0_2 = arith.constant 0 : index
    %3 = vector.load %arg1[%c0, %c0_1, %c0_2] : memref<2x8x768xf32, #tpu.memory_space<vmem>>, vector<2x8x768xf32>
    %c0_3 = arith.constant 0 : index
    %c0_4 = arith.constant 0 : index
    %4 = vector.load %arg5[%c0_3, %c0_4] : memref<2x768xf32, #tpu.memory_space<vmem>>, vector<2x768xf32>
    %cst = arith.constant dense<0.000000e+00> : vector<2x768xf32>
    %5 = vector.multi_reduction <add>, %3, %cst [1] : vector<2x8x768xf32> to vector<2x768xf32>
    %6 = arith.addf %4, %5 : vector<2x768xf32>
    %c0_5 = arith.constant 0 : index
    %c0_6 = arith.constant 0 : index
    %7 = vector.load %arg5[%c0_5, %c0_6] : memref<2x768xf32, #tpu.memory_space<vmem>>, vector<2x768xf32>
    tpu.vector_store %arg5[%c0_5, %c0_6], %6 {strides = array<i32>} : memref<2x768xf32, #tpu.memory_space<vmem>>, vector<2x768xf32>,
    %c0_i32_7 = arith.constant 0 : i32
    %8 = arith.cmpi eq, %arg0, %c0_i32_7 : i32
    %9 = arith.extui %8 : i1 to i32
    %c0_i32_8 = arith.constant 0 : i32
    %10 = arith.cmpi ne, %9, %c0_i32_8 : i32
    scf.if %10 {
      %c0_9 = arith.constant 0 : index
      %c0_10 = arith.constant 0 : index
      %11 = vector.load %arg5[%c0_9, %c0_10] : memref<2x768xf32, #tpu.memory_space<vmem>>, vector<2x768xf32>
      %cst_11 = arith.constant 1.250000e-01 : f32
      %12 = vector.broadcast %cst_11 : f32 to vector<2x768xf32>
      %13 = arith.mulf %11, %12 : vector<2x768xf32>
      %c0_12 = arith.constant 0 : index
      %c0_13 = arith.constant 0 : index
      %14 = vector.load %arg2[%c0_12, %c0_13] : memref<1x768xf32, #tpu.memory_space<vmem>>, vector<1x768xf32>
      %15 = vector.broadcast %14 : vector<1x768xf32> to vector<2x768xf32>
      %16 = arith.mulf %13, %15 : vector<2x768xf32>
      %cst_14 = arith.constant dense<0.000000e+00> : vector<2xf32>
      %17 = vector.multi_reduction <add>, %16, %cst_14 [1] : vector<2x768xf32> to vector<2xf32>
      %18 = vector.shape_cast %17 : vector<2xf32> to vector<2x1xf32>
      %c0_15 = arith.constant 0 : index
      %c0_16 = arith.constant 0 : index
      %19 = memref.load %arg3[%c0_15, %c0_16] : memref<1x1xf32, #tpu.memory_space<smem>>
      %20 = vector.broadcast %19 : f32 to vector<2x1xf32>
      %21 = arith.addf %18, %20 : vector<2x1xf32>
      %22 = arith.negf %21 : vector<2x1xf32>
      %23 = math.exp %22 : vector<2x1xf32>
      %cst_17 = arith.constant 1.000000e+00 : f32
      %24 = vector.broadcast %cst_17 : f32 to vector<2x1xf32>
      %25 = arith.addf %24, %23 : vector<2x1xf32>
      %26 = arith.divf %24, %25 : vector<2x1xf32>
      %cst_18 = arith.constant 4.000000e+00 : f32
      %27 = vector.broadcast %cst_18 : f32 to vector<2x1xf32>
      %28 = arith.mulf %26, %27 : vector<2x1xf32>
      %cst_19 = arith.constant 1.000000e+00 : f32
      %29 = vector.broadcast %cst_19 : f32 to vector<2x1xf32>
      %30 = arith.addf %28, %29 : vector<2x1xf32>
      %c0_20 = arith.constant 0 : index
      %c0_21 = arith.constant 0 : index
      %31 = vector.load %arg4[%c0_20, %c0_21] : memref<2x1xf32, #tpu.memory_space<vmem>>, vector<2x1xf32>
      tpu.vector_store %arg4[%c0_20, %c0_21], %30 {strides = array<i32>} : memref<2x1xf32, #tpu.memory_space<vmem>>, vector<2x1xf32>,
    } else {
    }
    return
  }
  func.func @transform_0(%arg0: i32) -> (i32, i32, i32) {
    %c0_i32 = arith.constant 0 : i32
    %c0_i32_0 = arith.constant 0 : i32
    %c0_i32_1 = arith.constant 0 : i32
    return %c0_i32, %arg0, %c0_i32_0 : i32, i32, i32
  }
  func.func @transform_1(%arg0: i32) -> (i32, i32) {
    %c0_i32 = arith.constant 0 : i32
    %c0_i32_0 = arith.constant 0 : i32
    %c0_i32_1 = arith.constant 0 : i32
    return %c0_i32, %c0_i32_0 : i32, i32
  }
  func.func @transform_2(%arg0: i32) -> (i32, i32) {
    %c0_i32 = arith.constant 0 : i32
    %c0_i32_0 = arith.constant 0 : i32
    %c0_i32_1 = arith.constant 0 : i32
    return %c0_i32, %c0_i32_0 : i32, i32
  }
  func.func @transform_3(%arg0: i32) -> (i32, i32) {
    %c0_i32 = arith.constant 0 : i32
    %c0_i32_0 = arith.constant 0 : i32
    %c0_i32_1 = arith.constant 0 : i32
    return %c0_i32, %c0_i32_0 : i32, i32
  }
}

</mosaic_0001>

<bundles_post_ra>
// kernel: tpu_custom_call.1
= control target key start
LH: loop header
LB: loop body
LE: loop exit
PB: predicated region body
PF: predicated region fallthrough
CT: control target
= control target key end

     0   :  { %9 = vsyncpa [#allocation5], 0  ;;  %s474_s0 = inlined_call_operand.hbm [shape: f32[2,8,768], index: 0, kind: input, shape index: {}]   ;;  %s475_s1 = inlined_call_operand.hbm [shape: f32[1,768], index: 1, kind: input, shape index: {}]   ;;  %s476_s2 = inlined_call_operand.<no memory space> [shape: f32[1,1], index: 2, kind: input, shape index: {}]   ;;  %s477_s3 = inlined_call_operand.vmem [shape: f32[2,1], index: 3, kind: output, shape index: {}]  }
   0x1   :  { %10 = vsyncpa [#allocation7], 0  ;;  %s404_s12 = smov [#allocation4]  }
   0x2   :  { %s16_s13 = sshll.u32 %s404_s12, 4  ;;  %s17_s13 = int_to_ptr.vmem [resolvable:$true] %s16_s13 }
   0x3   :  { %s368_s14 = scalar_lea.vmem %s17_s13, 1536  ;;  %p373_p1 = scmp.lt.s32.totalorder %s17_s13, %s17_s13 }
   0x4   :  { %p369_p0 = scmp.ne.s32.totalorder %s17_s13, %s368_s14  ;;  %p374_p2 = scmp.lt.s32.totalorder %s368_s14, %s368_s14 }
   0x6   :  { %p375_p3 = por %p374_p2, %p373_p1 }
   0x8   :  { %p376_p4 = pnand %p375_p3, %p369_p0 }
   0xa   :  { %379 = shalt.err (!%p376_p4)
}
   0xb   :  { %s405_s15 = smov 768   ;;  %s406_s16 = smov 48  }
   0xc   :  { %22 = dma.hbm_to_vmem [thread:$0]  %s474_s0, 1536, %s17_s13, [#allocation5], %s405_s15, %s405_s15, %s406_s16  }
   0xd   :  { %s407_s19 = smov [#allocation6]  }
   0xe   :  { %s29_s20 = sshll.u32 %s407_s19, 4  ;;  %s30_s20 = int_to_ptr.vmem [resolvable:$true] %s29_s20 }
   0xf   :  { %s388_s21 = scalar_lea.vmem %s30_s20, 96  ;;  %p393_p6 = scmp.lt.s32.totalorder %s30_s20, %s30_s20 }
  0x10   :  { %p389_p5 = scmp.ne.s32.totalorder %s30_s20, %s388_s21  ;;  %p394_p7 = scmp.lt.s32.totalorder %s388_s21, %s388_s21 }
  0x12   :  { %p395_p8 = por %p394_p7, %p393_p6 }
  0x14   :  { %p396_p9 = pnand %p395_p8, %p389_p5 }
  0x16   :  { %399 = shalt.err (!%p396_p9)
}
  0x17   :  { %32 = dma.hbm_to_vmem [thread:$0]  %s475_s1, 96, %s30_s20, [#allocation7]  }
  0x18   :  { %400 = dma.done.wait [#allocation5], 1536  }
  0x19   :  { %401 = vsyncadd [#allocation5], 4294965760 }
  0x1a   :  { %402 = dma.done.wait [#allocation7], 96  }
  0x1b   :  { %403 = vsyncadd [#allocation7], 4294967200  ;;  %v408_v0 = vmov 0.0   ;;  %v47_v1 = vld [vmem:[#allocation4] sm:$0xff]  ;;  %v48_v2 = vld [vmem:[#allocation4 + $0x8] sm:$0xff]  ;;  %v150_v10 = vlaneseq  ;;  %vm200_vm0 = vcmask 1041409  }
  0x1c   :  { %46 = vst [vmem:[#allocation2 + $0x8] sm:$0xf] %v408_v0  ;;  %v49_v3 = vld [vmem:[#allocation4 + $0x10] sm:$0xff]  ;;  %v50_v4 = vld [vmem:[#allocation4 + $0x18] sm:$0xff]  ;;  %v51_v5 = vld [vmem:[#allocation4 + $0x20] sm:$0xff]  ;;  %v61_v7 = vrot.slane %v47_v1, 4 }
  0x1d   :  { %v52_v6 = vld [vmem:[#allocation4 + $0x28] sm:$0xff]  ;;  %v67_v8 = vrot.slane %v48_v2, 4  ;;  %v73_v9 = vrot.slane %v49_v3, 4  ;;  %v53_v11 = vld [vmem:[#allocation4 + $0x30] sm:$0xff]  ;;  %v54_v12 = vld [vmem:[#allocation4 + $0x38] sm:$0xff]  ;;  %v79_v13 = vrot.slane %v50_v4, 4 }
  0x1e   :  { %v85_v14 = vrot.slane %v51_v5, 4  ;;  %v91_v15 = vrot.slane %v52_v6, 4  ;;  %v409_v16 = vmov 1983009808   ;;  %v62_v18 = vadd.f32 %v61_v7, %v47_v1  ;;  %v55_v43 = vld [vmem:[#allocation4 + $0x40] sm:$0xff]  ;;  %v56_v44 = vld [vmem:[#allocation4 + $0x48] sm:$0xff] }
  0x1f   :  { %v436_v17 = vunpack.c.l.s4 %v409_v16  ;;  %v68_v19 = vadd.f32 %v67_v8, %v48_v2  ;;  %v74_v20 = vadd.f32 %v73_v9, %v49_v3  ;;  %v97_v21 = vrot.slane %v53_v11, 4  ;;  %v57_v45 = vld [vmem:[#allocation4 + $0x50] sm:$0xff]  ;;  %v58_v50 = vld [vmem:[#allocation4 + $0x58] sm:$0xff] }
  0x20   :  { %v80_v22 = vadd.f32 %v79_v13, %v50_v4  ;;  %v86_v23 = vadd.f32 %v85_v14, %v51_v5  ;;  %v92_v24 = vadd.f32 %v91_v15, %v52_v6  ;;  %v103_v25 = vrot.slane %v54_v12, 4 }
  0x21   :  { %v63_v26 = vrot.slane %v62_v18, 2  ;;  %v69_v27 = vrot.slane %v68_v19, 2  ;;  %v75_v28 = vrot.slane %v74_v20, 2  ;;  %v98_v29 = vadd.f32 %v97_v21, %v53_v11 }
  0x22   :  { %v81_v30 = vrot.slane %v80_v22, 2  ;;  %v87_v31 = vrot.slane %v86_v23, 2  ;;  %v93_v32 = vrot.slane %v92_v24, 2  ;;  %v104_v33 = vadd.f32 %v103_v25, %v54_v12 }
  0x23   :  { %v64_v34 = vadd.f32 %v63_v26, %v62_v18  ;;  %v70_v35 = vadd.f32 %v69_v27, %v68_v19  ;;  %v76_v36 = vadd.f32 %v75_v28, %v74_v20  ;;  %v99_v37 = vrot.slane %v98_v29, 2  ;;  %v228_v28 = vld [vmem:[#allocation6] sm:$0x3f] }
  0x24   :  { %v82_v38 = vadd.f32 %v81_v30, %v80_v22  ;;  %v105_v39 = vrot.slane %v104_v33, 2  ;;  %v88_v40 = vadd.f32 %v87_v31, %v86_v23  ;;  %v438_v42 = vshrl.u32 %v150_v10, 7 }
  0x25   :  { %v100_v41 = vadd.f32 %v99_v37, %v98_v29  ;;  %v65_v46 = vrot.slane %v64_v34, 1  ;;  %v71_v47 = vrot.slane %v70_v35, 1  ;;  %v94_v48 = vadd.f32 %v93_v32, %v92_v24 }
  0x26   :  { %v106_v49 = vadd.f32 %v105_v39, %v104_v33  ;;  %v77_v51 = vrot.slane %v76_v36, 1  ;;  %v149_v52 = vunpack.c.0.s8 %v436_v17  ;;  %v83_v53 = vrot.slane %v82_v38, 1 }
  0x27   :  { %v101_v54 = vrot.slane %v100_v41, 1  ;;  %v232_v56 = vsub.s32 0, %v438_v42  ;;  %v89_v57 = vrot.slane %v88_v40, 1  ;;  %v109_v58 = vrot.slane %v55_v43, 4 }
  0x28   :  { %v107_v55 = vrot.slane %v106_v49, 1  ;;  %v115_v59 = vrot.slane %v56_v44, 4  ;;  %v121_v60 = vrot.slane %v57_v45, 4  ;;  %v66_v61 = vadd.f32 %v65_v46, %v64_v34 }
  0x29   :  { %v72_v62 = vadd.f32 %v71_v47, %v70_v35  ;;  %v95_v63 = vrot.slane %v94_v48, 1  ;;  %v127_v0 = vrot.slane %v58_v50, 4  ;;  %v78_v1 = vadd.f32 %v77_v51, %v76_v36 }
  0x2a   :  { %v110_v2 = vadd.f32 %v109_v58, %v55_v43  ;;  %v116_v3 = vadd.f32 %v115_v59, %v56_v44  ;;  %v122_v4 = vadd.f32 %v121_v60, %v57_v45  ;;  %v84_v5 = vadd.f32 %v83_v53, %v82_v38  ;;  %v60_v58 = vld [vmem:[#allocation2 + $0x8] sm:$0xf] }
  0x2b   :  { %v102_v6 = vadd.f32 %v101_v54, %v100_v41  ;;  %v108_v7 = vadd.f32 %v107_v55, %v106_v49  ;;  %v128_v8 = vadd.f32 %v127_v0, %v58_v50  ;;  %v236_v12 = vsub.s32 1, %v438_v42 }
  0x2c   :  { %v111_v9 = vrot.slane %v110_v2, 2  ;;  %v117_v10 = vrot.slane %v116_v3, 2  ;;  %v123_v11 = vrot.slane %v122_v4, 2  ;;  %v90_v13 = vadd.f32 %v89_v57, %v88_v40 }
  0x2d   :  { %v96_v14 = vadd.f32 %v95_v63, %v94_v48  ;;  %v129_v15 = vrot.slane %v128_v8, 2  ;;  %v240_v16 = vsub.s32 2, %v438_v42  ;;  %v145_v20 = vcombine.low %v66_v61, %v72_v62 }
  0x2e   :  { %v112_v17 = vadd.f32 %v111_v9, %v110_v2  ;;  %v118_v18 = vadd.f32 %v117_v10, %v116_v3  ;;  %v124_v19 = vadd.f32 %v123_v11, %v122_v4  ;;  %v146_v22 = vcombine.low %v78_v1, %v84_v5 }
  0x2f   :  { %v130_v21 = vadd.f32 %v129_v15, %v128_v8  ;;  %v445_v23 = vsub.s32 %v149_v52, %v438_v42  ;;  %v170_v24 = vcombine.low %v102_v6, %v108_v7  ;;  %v244_v29 = vsub.s32 3, %v438_v42 }
  0x30   :  { %v113_v25 = vrot.slane %v112_v17, 1  ;;  %v119_v26 = vrot.slane %v118_v18, 1  ;;  %v125_v27 = vrot.slane %v124_v19, 1  ;;  %v162_v31 = vcombine.low %v90_v13, %v96_v14 }
  0x31   :  { %v131_v30 = vrot.slane %v130_v21, 1  ;;  %v153_v35 = vrot.slane %v145_v20, %v445_v23  ;;  %v160_v37 = vrot.slane %v146_v22, %v445_v23  ;;  %v178_v38 = vrot.slane %v170_v24, %v445_v23 }
  0x32   :  { %v114_v32 = vadd.f32 %v113_v25, %v112_v17  ;;  %v120_v33 = vadd.f32 %v119_v26, %v118_v18  ;;  %v126_v34 = vadd.f32 %v125_v27, %v124_v19  ;;  %v233_v39 = vrot.slane %v228_v28, %v232_v56 }
  0x33   :  { %v132_v36 = vadd.f32 %v131_v30, %v130_v21  ;;  %v237_v41 = vrot.slane %v228_v28, %v236_v12  ;;  %v241_v43 = vrot.slane %v228_v28, %v240_v16  ;;  %v245_v44 = vrot.slane %v228_v28, %v244_v29 }
  0x34   :  { %v171_v40 = vcombine.low %v114_v32, %v120_v33  ;;  %v169_v47 = vrot.slane %v162_v31, %v445_v23  ;;  %v161_v49 = vcombine.low %v153_v35, %v160_v37  ;;  %vm202_vm1 = vcmask 1043459  }
  0x35   :  { %v187_v45 = vcombine.low %v126_v34, %v132_v36  ;;  %v254_v51 = vcombine.low %v233_v39, %v237_v41  ;;  %v255_v52 = vcombine.low %v241_v43, %v245_v44  ;;  %vm204_vm2 = vcmask 1045509  }
  0x36   :  { %v185_v46 = vrot.slane %v171_v40, %v445_v23  ;;  %vm206_vm3 = vcmask 1047559   ;;  %v248_v56 = vsub.s32 4, %v438_v42  ;;  %v252_v57 = vsub.s32 5, %v438_v42 }
  0x37   :  { %v194_v48 = vrot.slane %v187_v45, %v445_v23  ;;  %v262_v61 = vrot.slane %v254_v51, %v445_v23  ;;  %v269_v62 = vrot.slane %v255_v52, %v445_v23  ;;  %vm316_vm4 = vcmask 1041408  }
  0x38   :  { %v186_v50 = vcombine.low %v178_v38, %v185_v46  ;;  %v249_v5 = vrot.slane %v228_v28, %v248_v56  ;;  %v253_v6 = vrot.slane %v228_v28, %v252_v57  ;;  %v331_v33 = vstv %s476_s2 }
  0x39   :  { %v210_v53 = vrot.slane %v194_v48, 7  ;;  %v270_v7 = vcombine.low %v262_v61, %v269_v62  ;;  %vm341_vm5 = vcmask 1024  }
  0x3a   :  { %v199_v54 = vrot.slane %v186_v50, 7  ;;  %v271_v9 = vcombine.low %v249_v5, %v253_v6 }
  0x3b   :  { %v211_v55 = vsel %vm200_vm0, %v210_v53, %v169_v47 }
  0x3c   :  { %v201_v59 = vsel %vm200_vm0, %v199_v54, %v161_v49  ;;  %v212_v60 = vsel %vm202_vm1, %v210_v53, %v211_v55  ;;  %v278_v12 = vrot.slane %v271_v9, %v445_v23 }
  0x3d   :  { %v203_v63 = vsel %vm202_vm1, %v199_v54, %v201_v59  ;;  %v213_v0 = vsel %vm204_vm2, %v210_v53, %v212_v60 }
  0x3e   :  { %v205_v1 = vsel %vm204_vm2, %v199_v54, %v203_v63  ;;  %v214_v2 = vsel %vm206_vm3, %v210_v53, %v213_v0 }
  0x3f   :  { %v207_v3 = vsel %vm206_vm3, %v199_v54, %v205_v1  ;;  %v218_v4 = vadd.f32 %v214_v2, %v60_v58 }
  0x40   :  { %v226_v8 = vmul.f32 0.125, %v207_v3 }
  0x41   :  { %220 = vst [vmem:[#allocation2 + $0x8] sm:$0xf] %v218_v4 }
  0x42   :  { %v281_v42 = vmul.f32 %v270_v7, %v226_v8 }
  0x44   :  { %v285_v10 = vcombine.high %v281_v42, %v281_v42  ;;  %v292_v11 = vrot.slane %v281_v42, %v445_v23 }
  0x46   :  { %v299_v14 = vrot.slane %v285_v10, %v445_v23  ;;  %v300_v15 = vcombine.high %v292_v11, %v292_v11  ;;  %v317_v16 = vsel %vm316_vm4, %v292_v11, 0.0 }
  0x48   :  { %v225_v13 = vld [vmem:[#allocation2 + $0x8] sm:$0xf]  ;;  %v301_v18 = vcombine.high %v299_v14, %v299_v14  ;;  %v318_v19 = vsel %vm316_vm4, %v300_v15, 0.0  ;;  %v320_v20 = vsel %vm316_vm4, %v299_v14, 0.0 }
  0x49   :  { %v227_v17 = vmul.f32 0.125, %v225_v13  ;;  %v319_v22 = vadd.f32 %v318_v19, %v317_v16 }
  0x4a   :  { %v322_v24 = vsel %vm316_vm4, %v301_v18, 0.0 }
  0x4b   :  { %v282_v21 = vmul.f32 %v278_v12, %v227_v17  ;;  %v321_v26 = vadd.f32 %v320_v20, %v319_v22 }
  0x4d   :  { %v308_v25 = vrot.slane %v282_v21, %v445_v23  ;;  %v323_v28 = vadd.f32 %v322_v24, %v321_v26 }
  0x4f   :  { %v309_v27 = vcombine.high %v308_v25, %v308_v25  ;;  %v324_v29 = vsel %vm316_vm4, %v308_v25, 0.0 }
  0x50   :  { %v325_v30 = vadd.f32 %v324_v29, %v323_v28 }
  0x51   :  { %v326_v31 = vsel %vm316_vm4, %v309_v27, 0.0 }
  0x52   :  { %v327_v32 = vadd.f32 %v326_v31, %v325_v30 }
  0x54   :  { %328 = vadd.xlane.f32.xlu0 %v327_v32 }
  0xdd   :  { %v329_v34 = vpop.xlane.xlu0 %328 }
  0xde   :  { %v332_v35 = vadd.f32 %v331_v33, %v329_v34 }
  0xe0   :  { %v349_v36 = vmul.f32 -1.442695, %v332_v35 }
  0xe2   :  { %356 = vpow2.f32 %v349_v36 }
  0xef   :  { %v357_v37 = vpop.eup %356 }
  0xf0   :  { %v336_v23 = vadd.f32 1.0, %v357_v37 }
  0xf2   :  { %358 = vrcp.f32 %v336_v23 }
  0xff   :  { %v359_v38 = vpop.eup %358 }
 0x100   :  { %v339_v39 = vmul.f32 4.0, %v359_v38 }
 0x102   :  { %v340_v40 = vadd.f32 1.0, %v339_v39 }
 0x104   :  { %342 = vst.msk [vmem:[%s477_s3] sm:$0x3] %vm341_vm5, %v340_v40 }
 0x105   :  { %347 = vsyncpa [#allocation5], 1 }
 0x106   :  { %348 = vsyncpa [#allocation7], 1 }

</bundles_post_ra>
